<compile_context>
chip_gen: v6e
topology: v6e:2x2x1
jax: 0.10.0
libtpu: 0.0.40
codegen_flags: <defaults>
</compile_context>

<pallas_src>
import functools

import numpy as np
import jax
import jax.numpy as jnp
from jax import lax
from jax.experimental import pallas as pl
from jax.experimental.pallas import tpu as pltpu

# ----------------------------- config (scaled-down SD UNet) -----------------------------
BASE = 32          # stands in for 320
D_CONTEXT = 64     # stands in for 768
N_TIME = 4 * BASE  # stands in for 1280
N_HEAD = 8


def _round_up(x, m):
    return (x + m - 1) // m * m


# ----------------------------- in-kernel math helpers -----------------------------------
def _silu(x):
    # x * sigmoid(x); reciprocal goes to the EUP slot (essentially free).
    return x * pl.reciprocal(1.0 + jnp.exp(-x), approx=True)


def _gelu(x):
    # exact-erf GELU via Abramowitz & Stegun 7.1.26 (|err| < 1.5e-7), built from exp only.
    a1, a2, a3, a4, a5 = 0.254829592, -0.284496736, 1.421413741, -1.453152027, 1.061405429
    p = 0.3275911
    z = x * 0.7071067811865476
    sgn = jnp.where(z >= 0.0, 1.0, -1.0)
    za = jnp.abs(z)
    t = 1.0 / (1.0 + p * za)
    poly = ((((a5 * t + a4) * t + a3) * t + a2) * t + a1) * t
    erf = sgn * (1.0 - poly * jnp.exp(-za * za))
    return 0.5 * x * (1.0 + erf)


# ----------------------------- tiled matmul (+ fusions) ----------------------------------
def _mm_tiles(M, N, K):
    tm = min(256, _round_up(M, 8))
    tn = 256 if (N % 256 == 0) else 128
    tk = 512 if (K % 512 == 0) else (256 if (K % 256 == 0) else 128)
    Mp = _round_up(M, tm)
    Np = _round_up(N, tn)
    Kp = _round_up(K, tk)
    return tm, tn, tk, Mp, Np, Kp


def _matmul_kernel(*refs, act, x_act, nk, has_res):
    if has_res:
        x_ref, w_ref, b_ref, r_ref, o_ref, acc_ref = refs
    else:
        x_ref, w_ref, b_ref, o_ref, acc_ref = refs
        r_ref = None
    k = pl.program_id(2)

    @pl.when(k == 0)
    def _():
        acc_ref[...] = jnp.zeros_like(acc_ref)

    x = x_ref[...]
    if x_act == "silu":
        x = _silu(x.astype(jnp.float32)).astype(x_ref.dtype)
    acc_ref[...] += jnp.dot(x, w_ref[...], preferred_element_type=jnp.float32)

    @pl.when(k == nk - 1)
    def _():
        y = acc_ref[...] + b_ref[...]
        if act == "silu":
            y = _silu(y)
        elif act == "gelu":
            y = _gelu(y)
        if has_res:
            y = y + r_ref[...].astype(jnp.float32)
        o_ref[...] = y.astype(o_ref.dtype)


def matmul(x, w, b=None, act="none", x_act="none", res=None, out_dtype=jnp.bfloat16):
    """act((x_act(x)) @ w + b) (+ res); x:[M,K], w:[K,N], b:[N]|None, res:[M,N]|None."""
    M, K = x.shape
    K2, N = w.shape
    assert K == K2
    x = x.astype(jnp.bfloat16)
    w = w.astype(jnp.bfloat16)
    b2 = (jnp.zeros((N,), jnp.float32) if b is None else b.astype(jnp.float32)).reshape(1, N)
    tm, tn, tk, Mp, Np, Kp = _mm_tiles(M, N, K)
    if (Mp, Kp) != (M, K):
        x = jnp.pad(x, ((0, Mp - M), (0, Kp - K)))
    if (Kp, Np) != (K, N):
        w = jnp.pad(w, ((0, Kp - K), (0, Np - N)))
    if Np != N:
        b2 = jnp.pad(b2, ((0, 0), (0, Np - N)))
    has_res = res is not None
    args = [x, w, b2]
    in_specs = [
        pl.BlockSpec((tm, tk), lambda i, j, k: (i, k)),
        pl.BlockSpec((tk, tn), lambda i, j, k: (k, j)),
        pl.BlockSpec((1, tn), lambda i, j, k: (0, j)),
    ]
    if has_res:
        r = res.astype(jnp.bfloat16)
        if (Mp, Np) != (M, N):
            r = jnp.pad(r, ((0, Mp - M), (0, Np - N)))
        args.append(r)
        in_specs.append(pl.BlockSpec((tm, tn), lambda i, j, k: (i, j)))
    nk = Kp // tk
    out = pl.pallas_call(
        functools.partial(_matmul_kernel, act=act, x_act=x_act, nk=nk, has_res=has_res),
        grid=(Mp // tm, Np // tn, nk),
        in_specs=in_specs,
        out_specs=pl.BlockSpec((tm, tn), lambda i, j, k: (i, j)),
        out_shape=jax.ShapeDtypeStruct((Mp, Np), out_dtype),
        scratch_shapes=[pltpu.VMEM((tm, tn), jnp.float32)],
        compiler_params=pltpu.CompilerParams(
            dimension_semantics=("parallel", "parallel", "arbitrary")),
    )(*args)
    if (Mp, Np) != (M, N):
        out = out[:M, :N]
    return out


def _matmul_geglu_kernel(x_ref, wa_ref, wg_ref, ba_ref, bg_ref, o_ref,
                         acca_ref, accg_ref, *, nk):
    k = pl.program_id(2)

    @pl.when(k == 0)
    def _():
        acca_ref[...] = jnp.zeros_like(acca_ref)
        accg_ref[...] = jnp.zeros_like(accg_ref)

    x = x_ref[...]
    acca_ref[...] += jnp.dot(x, wa_ref[...], preferred_element_type=jnp.float32)
    accg_ref[...] += jnp.dot(x, wg_ref[...], preferred_element_type=jnp.float32)

    @pl.when(k == nk - 1)
    def _():
        a = acca_ref[...] + ba_ref[...]
        g = accg_ref[...] + bg_ref[...]
        o_ref[...] = (a * _gelu(g)).astype(o_ref.dtype)


def matmul_geglu(x, wa, wg, ba, bg):
    """(x@wa+ba) * gelu(x@wg+bg); avoids materializing the [M, 8C] intermediate."""
    M, K = x.shape
    N = wa.shape[1]
    x = x.astype(jnp.bfloat16)
    wa = wa.astype(jnp.bfloat16)
    wg = wg.astype(jnp.bfloat16)
    ba2 = ba.astype(jnp.float32).reshape(1, N)
    bg2 = bg.astype(jnp.float32).reshape(1, N)
    tm, tn, tk, Mp, Np, Kp = _mm_tiles(M, N, K)
    if (Mp, Kp) != (M, K):
        x = jnp.pad(x, ((0, Mp - M), (0, Kp - K)))
    if (Kp, Np) != (K, N):
        wa = jnp.pad(wa, ((0, Kp - K), (0, Np - N)))
        wg = jnp.pad(wg, ((0, Kp - K), (0, Np - N)))
    if Np != N:
        ba2 = jnp.pad(ba2, ((0, 0), (0, Np - N)))
        bg2 = jnp.pad(bg2, ((0, 0), (0, Np - N)))
    nk = Kp // tk
    out = pl.pallas_call(
        functools.partial(_matmul_geglu_kernel, nk=nk),
        grid=(Mp // tm, Np // tn, nk),
        in_specs=[
            pl.BlockSpec((tm, tk), lambda i, j, k: (i, k)),
            pl.BlockSpec((tk, tn), lambda i, j, k: (k, j)),
            pl.BlockSpec((tk, tn), lambda i, j, k: (k, j)),
            pl.BlockSpec((1, tn), lambda i, j, k: (0, j)),
            pl.BlockSpec((1, tn), lambda i, j, k: (0, j)),
        ],
        out_specs=pl.BlockSpec((tm, tn), lambda i, j, k: (i, j)),
        out_shape=jax.ShapeDtypeStruct((Mp, Np), jnp.bfloat16),
        scratch_shapes=[pltpu.VMEM((tm, tn), jnp.float32),
                        pltpu.VMEM((tm, tn), jnp.float32)],
        compiler_params=pltpu.CompilerParams(
            dimension_semantics=("parallel", "parallel", "arbitrary")),
    )(x, wa, wg, ba2, bg2)
    if (Mp, Np) != (M, N):
        out = out[:M, :N]
    return out


# ----------------------------- group-norm stats (scale/shift) ----------------------------
@functools.lru_cache(maxsize=None)
def _group_avg_matrix(C, G, hw):
    Cg = C // G
    idx = np.arange(C) // Cg
    A = (idx[:, None] == idx[None, :]).astype(np.float32) / float(hw * Cg)
    return jnp.asarray(A)


def _gn_stats_kernel(x_ref, g_ref, b_ref, a_ref, sc_ref, sh_ref, *, eps):
    x = x_ref[0].astype(jnp.float32)                  # [HW, C]
    s1 = jnp.sum(x, axis=0, keepdims=True)            # [1, C]
    s2 = jnp.sum(x * x, axis=0, keepdims=True)        # [1, C]
    mean = jnp.dot(s1, a_ref[...], preferred_element_type=jnp.float32)   # group mean / ch
    ex2 = jnp.dot(s2, a_ref[...], preferred_element_type=jnp.float32)
    var = jnp.maximum(ex2 - mean * mean, 0.0)
    rstd = lax.rsqrt(var + eps)
    scale = g_ref[...] * rstd
    shift = b_ref[...] - mean * scale
    sc_ref[...] = scale
    sh_ref[...] = shift


def group_norm_stats(x3, gamma, beta, *, num_groups=32, eps=1e-5):
    """x3: [N, HW, C]; returns per-(sample, channel) affine (scale, shift), f32."""
    N, HW, C = x3.shape
    A = _group_avg_matrix(C, num_groups, HW)
    sc, sh = pl.pallas_call(
        functools.partial(_gn_stats_kernel, eps=eps),
        grid=(N,),
        in_specs=[
            pl.BlockSpec((1, HW, C), lambda n: (n, 0, 0)),
            pl.BlockSpec((1, C), lambda n: (0, 0)),
            pl.BlockSpec((1, C), lambda n: (0, 0)),
            pl.BlockSpec((C, C), lambda n: (0, 0)),
        ],
        out_specs=(pl.BlockSpec((1, C), lambda n: (n, 0)),
                   pl.BlockSpec((1, C), lambda n: (n, 0))),
        out_shape=(jax.ShapeDtypeStruct((N, C), jnp.float32),
                   jax.ShapeDtypeStruct((N, C), jnp.float32)),
        compiler_params=pltpu.CompilerParams(dimension_semantics=("parallel",)),
    )(x3.astype(jnp.bfloat16), gamma.reshape(1, C).astype(jnp.float32),
      beta.reshape(1, C).astype(jnp.float32), A)
    return sc, sh


# ----------------------------- fused 3x3 conv (norm/SiLU prologue, adds in epilogue) ------
def _conv3x3_kernel(x_ref, sc_ref, sh_ref, w_ref, b_ref, t_ref, *rest,
                    H, W, silu_in, affine, has_res):
    if has_res:
        r_ref, o_ref, acc_ref = rest
    else:
        o_ref, acc_ref = rest
        r_ref = None
    HW = H * W

    # prologue: per-channel GroupNorm affine + SiLU (zero-padding handled by tap masking)
    x = x_ref[0]                                      # [HW, Cin] bf16
    if affine or silu_in:
        xf = x.astype(jnp.float32)
        if affine:
            xf = xf * sc_ref[...] + sh_ref[...]
        if silu_in:
            xf = _silu(xf)
        xn = xf.astype(jnp.bfloat16)
    else:
        xn = x

    col = lax.broadcasted_iota(jnp.int32, (HW, 1), 0) % W
    acc_ref[...] = jnp.zeros_like(acc_ref)
    # 9-tap accumulation: tap (di, dj) contributes x[(r+di)*W + (c+dj)] @ W_tap,
    # implemented as a shifted flat slice + column-validity mask (no im2col, no reshape).
    for tap in range(9):
        di, dj = tap // 3 - 1, tap % 3 - 1
        s = di * W + dj
        L = HW - abs(s)
        if L <= 0:
            continue
        p0 = max(0, -s)
        src0 = max(0, s)
        xs = xn[src0:src0 + L, :]
        cj = col[p0:p0 + L, :] + dj
        valid = (cj >= 0) & (cj < W)
        xm = jnp.where(valid, xs, jnp.zeros_like(xs))
        acc_ref[p0:p0 + L, :] += jnp.dot(xm, w_ref[tap],
                                         preferred_element_type=jnp.float32)

    # epilogue: bias + time-embedding add + residual add, all in f32
    y = acc_ref[...] + b_ref[...] + t_ref[...]
    if has_res:
        y = y + r_ref[0].astype(jnp.float32)
    o_ref[0] = y.astype(o_ref.dtype)


def conv2d_3x3(x_nhwc, w9, b, *, scale=None, shift=None, silu_in=False,
               t_add=None, res3=None, out_dtype=jnp.bfloat16):
    """Fused 3x3 conv (stride 1, pad 1). w9: [9, Cin, Cout]; res3: [N, HW, Cout]|None."""
    N, H, W, Cin = x_nhwc.shape
    Cout = w9.shape[-1]
    HW = H * W
    x3 = x_nhwc.reshape(N, HW, Cin).astype(jnp.bfloat16)
    w9 = w9.astype(jnp.bfloat16)
    b2 = b.reshape(1, Cout).astype(jnp.float32)
    affine = scale is not None
    if not affine:
        scale = jnp.ones((N, Cin), jnp.float32)
        shift = jnp.zeros((N, Cin), jnp.float32)
    if t_add is None:
        t2 = jnp.zeros((N, Cout), jnp.float32)
    else:
        t2 = jnp.broadcast_to(t_add.astype(jnp.float32).reshape(-1, Cout), (N, Cout))
    has_res = res3 is not None

    args = [x3, scale, shift, w9, b2, t2]
    in_specs = [
        pl.BlockSpec((1, HW, Cin), lambda n: (n, 0, 0)),
        pl.BlockSpec((1, Cin), lambda n: (n, 0)),
        pl.BlockSpec((1, Cin), lambda n: (n, 0)),
        pl.BlockSpec((9, Cin, Cout), lambda n: (0, 0, 0)),
        pl.BlockSpec((1, Cout), lambda n: (0, 0)),
        pl.BlockSpec((1, Cout), lambda n: (n, 0)),
    ]
    if has_res:
        args.append(res3.astype(jnp.bfloat16))
        in_specs.append(pl.BlockSpec((1, HW, Cout), lambda n: (n, 0, 0)))

    out = pl.pallas_call(
        functools.partial(_conv3x3_kernel, H=H, W=W, silu_in=silu_in,
                          affine=affine, has_res=has_res),
        grid=(N,),
        in_specs=in_specs,
        out_specs=pl.BlockSpec((1, HW, Cout), lambda n: (n, 0, 0)),
        out_shape=jax.ShapeDtypeStruct((N, HW, Cout), out_dtype),
        scratch_shapes=[pltpu.VMEM((HW, Cout), jnp.float32)],
        compiler_params=pltpu.CompilerParams(dimension_semantics=("parallel",)),
    )(*args)
    return out.reshape(N, H, W, Cout)


# ----------------------------- fused group-norm + 1x1 conv (attention entry) -------------
def _norm_linear_kernel(x_ref, sc_ref, sh_ref, w_ref, b_ref, o_ref):
    x = x_ref[0].astype(jnp.float32)
    xn = (x * sc_ref[...] + sh_ref[...]).astype(jnp.bfloat16)
    y = jnp.dot(xn, w_ref[...], preferred_element_type=jnp.float32) + b_ref[...]
    o_ref[0] = y.astype(o_ref.dtype)


def norm_linear(x3, sc, sh, w, b):
    N, HW, C = x3.shape
    Cout = w.shape[-1]
    return pl.pallas_call(
        _norm_linear_kernel,
        grid=(N,),
        in_specs=[
            pl.BlockSpec((1, HW, C), lambda n: (n, 0, 0)),
            pl.BlockSpec((1, C), lambda n: (n, 0)),
            pl.BlockSpec((1, C), lambda n: (n, 0)),
            pl.BlockSpec((C, Cout), lambda n: (0, 0)),
            pl.BlockSpec((1, Cout), lambda n: (0, 0)),
        ],
        out_specs=pl.BlockSpec((1, HW, Cout), lambda n: (n, 0, 0)),
        out_shape=jax.ShapeDtypeStruct((N, HW, Cout), jnp.bfloat16),
        compiler_params=pltpu.CompilerParams(dimension_semantics=("parallel",)),
    )(x3.astype(jnp.bfloat16), sc, sh, w.astype(jnp.bfloat16),
      b.reshape(1, Cout).astype(jnp.float32))


# ----------------------------- layer norm -------------------------------------------------
def _layernorm_kernel(x_ref, g_ref, b_ref, o_ref, *, eps):
    x = x_ref[...].astype(jnp.float32)
    mean = jnp.mean(x, axis=-1, keepdims=True)
    var = jnp.mean(jnp.square(x - mean), axis=-1, keepdims=True)
    y = (x - mean) * lax.rsqrt(var + eps)
    o_ref[...] = (y * g_ref[...] + b_ref[...]).astype(o_ref.dtype)


def layer_norm(x, gamma, beta, eps=1e-5):
    # TODO(synk): at full scale fuse layer-norm into the consumer matmul prologue.
    M, C = x.shape
    return pl.pallas_call(
        functools.partial(_layernorm_kernel, eps=eps),
        out_shape=jax.ShapeDtypeStruct((M, C), jnp.bfloat16),
    )(x.astype(jnp.bfloat16), gamma.reshape(1, C).astype(jnp.float32),
      beta.reshape(1, C).astype(jnp.float32))


# ----------------------------- attention (all heads per kernel instance) ------------------
def _mha_core(q, k, v, n_head, scale):
    # q: [Sq, C], k/v: [Sk, C], bf16; heads sliced from the lane (channel) axis in-kernel.
    # TODO(synk): replace with flash-style online softmax before scaling to full SD shapes.
    C = q.shape[-1]
    d = C // n_head
    outs = []
    for h in range(n_head):
        qh = q[:, h * d:(h + 1) * d]
        kh = k[:, h * d:(h + 1) * d]
        vh = v[:, h * d:(h + 1) * d]
        s = lax.dot_general(qh, kh, (((1,), (1,)), ((), ())),
                            preferred_element_type=jnp.float32) * scale
        m = jnp.max(s, axis=-1, keepdims=True)
        p = jnp.exp(s - m)
        p = p * pl.reciprocal(jnp.sum(p, axis=-1, keepdims=True), approx=True)
        outs.append(jnp.dot(p.astype(vh.dtype), vh, preferred_element_type=jnp.float32))
    return jnp.concatenate(outs, axis=-1)


def _self_attn_kernel(qkv_ref, o_ref, *, n_head, scale):
    qkv = qkv_ref[0]
    C = qkv.shape[-1] // 3
    out = _mha_core(qkv[:, :C], qkv[:, C:2 * C], qkv[:, 2 * C:], n_head, scale)
    o_ref[0] = out.astype(o_ref.dtype)


def _cross_attn_kernel(q_ref, kv_ref, o_ref, *, n_head, scale):
    q = q_ref[0]
    kv = kv_ref[0]
    C = q.shape[-1]
    out = _mha_core(q, kv[:, :C], kv[:, C:], n_head, scale)
    o_ref[0] = out.astype(o_ref.dtype)


def self_attention(qkv, n_head):
    # qkv: [N, S, 3C] packed projection (no HBM split / head transposes).
    N, S, C3 = qkv.shape
    C = C3 // 3
    scale = 1.0 / float((C // n_head) ** 0.5)
    return pl.pallas_call(
        functools.partial(_self_attn_kernel, n_head=n_head, scale=scale),
        grid=(N,),
        in_specs=[pl.BlockSpec((1, S, C3), lambda n: (n, 0, 0))],
        out_specs=pl.BlockSpec((1, S, C), lambda n: (n, 0, 0)),
        out_shape=jax.ShapeDtypeStruct((N, S, C), jnp.bfloat16),
        compiler_params=pltpu.CompilerParams(dimension_semantics=("parallel",)),
    )(qkv.astype(jnp.bfloat16))


def cross_attention(q, kv, n_head):
    # q: [N, Sq, C]; kv: [N, Sk, 2C] packed (k | v).
    N, Sq, C = q.shape
    Sk = kv.shape[1]
    scale = 1.0 / float((C // n_head) ** 0.5)
    return pl.pallas_call(
        functools.partial(_cross_attn_kernel, n_head=n_head, scale=scale),
        grid=(N,),
        in_specs=[pl.BlockSpec((1, Sq, C), lambda n: (n, 0, 0)),
                  pl.BlockSpec((1, Sk, 2 * C), lambda n: (n, 0, 0))],
        out_specs=pl.BlockSpec((1, Sq, C), lambda n: (n, 0, 0)),
        out_shape=jax.ShapeDtypeStruct((N, Sq, C), jnp.bfloat16),
        compiler_params=pltpu.CompilerParams(dimension_semantics=("parallel",)),
    )(q.astype(jnp.bfloat16), kv.astype(jnp.bfloat16))


# ----------------------------- deterministic parameter init ------------------------------
_KEY = jax.random.PRNGKey(0)
_COUNTER = [0]


def _w(shape, std=0.02):
    _COUNTER[0] += 1
    k = jax.random.fold_in(_KEY, _COUNTER[0])
    return (std * jax.random.normal(k, shape)).astype(jnp.bfloat16)


def p_linear(din, dout, bias=True):
    return {"w": _w((din, dout)),
            "b": jnp.zeros((dout,), jnp.float32) if bias else None}


def p_conv3(cin, cout):
    return {"w": _w((9, cin, cout)), "b": jnp.zeros((cout,), jnp.float32)}


def p_conv1(cin, cout):
    return {"w": _w((cin, cout)), "b": jnp.zeros((cout,), jnp.float32)}


def p_norm(c):
    return {"g": jnp.ones((c,), jnp.float32), "b": jnp.zeros((c,), jnp.float32)}


def p_residual(cin, cout, n_time):
    p = {"gn1": p_norm(cin), "conv1": p_conv3(cin, cout), "lt": p_linear(n_time, cout),
         "gnm": p_norm(cout), "convm": p_conv3(cout, cout)}
    if cin != cout:
        p["res"] = p_conv1(cin, cout)
    return p


def p_attention(n_head, n_embed, d_context):
    c = n_head * n_embed
    return {
        "n_head": n_head,
        "gn": p_norm(c), "ci": p_conv1(c, c),
        "ln1": p_norm(c),
        "attn1": {"in_w": _w((c, 3 * c)), "out_w": _w((c, c)),
                  "out_b": jnp.zeros((c,), jnp.float32)},
        "ln2": p_norm(c),
        "attn2": {"q_w": _w((c, c)), "k_w": _w((d_context, c)), "v_w": _w((d_context, c)),
                  "out_w": _w((c, c)), "out_b": jnp.zeros((c,), jnp.float32)},
        "ln3": p_norm(c),
        "gg1": {"wa": _w((c, 4 * c)), "wg": _w((c, 4 * c)),
                "ba": jnp.zeros((4 * c,), jnp.float32),
                "bg": jnp.zeros((4 * c,), jnp.float32)},
        "gg2": p_linear(4 * c, c),
        "co": p_conv1(c, c),
    }


def build_unet_params():
    C1, C2, C3 = BASE, 2 * BASE, 4 * BASE
    nt = N_TIME

    def res(a, b): return ("res", p_residual(a, b, nt))
    def attn(ne): return ("attn", p_attention(N_HEAD, ne, D_CONTEXT))
    def conv(a, b, s): return ("conv", {"w": _w((9, a, b)),
                                        "b": jnp.zeros((b,), jnp.float32), "stride": s})
    def up(c): return ("up", p_conv3(c, c))

    e1, e2, e3 = C1 // N_HEAD, C2 // N_HEAD, C3 // N_HEAD
    encoders = [
        [conv(4, C1, 1)],
        [res(C1, C1), attn(e1)],
        [res(C1, C1), attn(e1)],
        [conv(C1, C1, 2)],
        [res(C1, C2), attn(e2)],
        [res(C2, C2), attn(e2)],
        [conv(C2, C2, 2)],
        [res(C2, C3), attn(e3)],
        [res(C3, C3), attn(e3)],
        [conv(C3, C3, 2)],
        [res(C3, C3)],
        [res(C3, C3)],
    ]
    bottleneck = [res(C3, C3), attn(e3), res(C3, C3)]
    decoders = [
        [res(2 * C3, C3)],
        [res(2 * C3, C3)],
        [res(2 * C3, C3), up(C3)],
        [res(2 * C3, C3), attn(e3)],
        [res(2 * C3, C3), attn(e3)],
        [res(C3 + C2, C3), attn(e3), up(C3)],
        [res(C3 + C2, C2), attn(e2)],
        [res(2 * C2, C2), attn(e2)],
        [res(C2 + C1, C2), attn(e2), up(C2)],
        [res(C2 + C1, C1), attn(e1)],
        [res(2 * C1, C1), attn(e1)],
        [res(2 * C1, C1), attn(e1)],
    ]
    return {"encoders": encoders, "bottleneck": bottleneck, "decoders": decoders}


def build_params():
    return {
        "time_embedding": {"l1": p_linear(BASE, 4 * BASE), "l2": p_linear(4 * BASE, 4 * BASE)},
        "unet": build_unet_params(),
        "final": {"gn": p_norm(BASE), "conv": p_conv3(BASE, 4)},
    }


# ----------------------------- module forwards (NHWC internally) --------------------------
def time_embedding_fwd(p, t):
    t = matmul(t, p["l1"]["w"], p["l1"]["b"], act="silu", out_dtype=jnp.float32)
    t = matmul(t, p["l2"]["w"], p["l2"]["b"], out_dtype=jnp.float32)
    return t


def residual_block_fwd(p, x, t_emb):
    # x: [N, H, W, Cin] bf16; t_emb: [1, N_TIME] f32
    N, H, W, Cin = x.shape
    Cout = p["conv1"]["w"].shape[-1]
    HW = H * W
    x3 = x.reshape(N, HW, Cin)

    if "res" in p:
        res3 = matmul(x3.reshape(N * HW, Cin), p["res"]["w"], p["res"]["b"]).reshape(N, HW, Cout)
    else:
        res3 = x3

    # SiLU(time) @ W + b  -> [1, Cout]  (added in the conv_1 epilogue)
    tvec = matmul(t_emb, p["lt"]["w"], p["lt"]["b"], x_act="silu", out_dtype=jnp.float32)

    sc1, sh1 = group_norm_stats(x3, p["gn1"]["g"], p["gn1"]["b"], eps=1e-5)
    h = conv2d_3x3(x, p["conv1"]["w"], p["conv1"]["b"],
                   scale=sc1, shift=sh1, silu_in=True, t_add=tvec)

    h3 = h.reshape(N, HW, Cout)
    scm, shm = group_norm_stats(h3, p["gnm"]["g"], p["gnm"]["b"], eps=1e-5)
    out = conv2d_3x3(h, p["convm"]["w"], p["convm"]["b"],
                     scale=scm, shift=shm, silu_in=True, res3=res3)
    return out


def attention_block_fwd(p, x, context):
    n_head = p["n_head"]
    N, H, W, C = x.shape
    HW = H * W
    x3 = x.reshape(N, HW, C)
    residual_long = x3.reshape(N * HW, C)

    # groupnorm (eps 1e-6) fused into the 1x1 conv_input
    sc, sh = group_norm_stats(x3, p["gn"]["g"], p["gn"]["b"], eps=1e-6)
    h3 = norm_linear(x3, sc, sh, p["ci"]["w"], p["ci"]["b"])

    # --- self attention (no in_proj bias); residual add fused into out-proj epilogue ---
    h = h3.reshape(N * HW, C)
    rs = h
    hn = layer_norm(h, p["ln1"]["g"], p["ln1"]["b"])
    qkv = matmul(hn, p["attn1"]["in_w"], None).reshape(N, HW, 3 * C)
    a = self_attention(qkv, n_head)
    h = matmul(a.reshape(N * HW, C), p["attn1"]["out_w"], p["attn1"]["out_b"], res=rs)

    # --- cross attention with context ---
    rs = h
    hn = layer_norm(h, p["ln2"]["g"], p["ln2"]["b"])
    Sk, d_ctx = context.shape[1], context.shape[2]
    q = matmul(hn, p["attn2"]["q_w"], None).reshape(N, HW, C)
    kv_w = jnp.concatenate([p["attn2"]["k_w"], p["attn2"]["v_w"]], axis=-1)
    kv = matmul(context.reshape(N * Sk, d_ctx), kv_w, None).reshape(N, Sk, 2 * C)
    a = cross_attention(q, kv, n_head)
    h = matmul(a.reshape(N * HW, C), p["attn2"]["out_w"], p["attn2"]["out_b"], res=rs)

    # --- GEGLU feed-forward (a * gelu(gate) fused into the first matmul epilogue) ---
    rs = h
    hn = layer_norm(h, p["ln3"]["g"], p["ln3"]["b"])
    g = matmul_geglu(hn, p["gg1"]["wa"], p["gg1"]["wg"], p["gg1"]["ba"], p["gg1"]["bg"])
    h = matmul(g, p["gg2"]["w"], p["gg2"]["b"], res=rs)

    # conv_output (1x1) with the long residual fused into the epilogue
    out = matmul(h, p["co"]["w"], p["co"]["b"], res=residual_long)
    return out.reshape(N, H, W, C)


def upsample_fwd(p, x):
    x = jnp.repeat(jnp.repeat(x, 2, axis=1), 2, axis=2)          # nearest, scale 2 (NHWC)
    return conv2d_3x3(x, p["w"], p["b"])


def downsample_conv_fwd(p, x):
    # stride-2 3x3 conv == stride-1 conv subsampled at even positions.
    # TODO(synk): at full scale do strided tap accumulation in-kernel instead of 4x compute.
    y = conv2d_3x3(x, p["w"], p["b"])
    return y[:, ::2, ::2, :]


def output_layer_fwd(p, x):
    N, H, W, C = x.shape
    x3 = x.reshape(N, H * W, C)
    sc, sh = group_norm_stats(x3, p["gn"]["g"], p["gn"]["b"], eps=1e-5)
    return conv2d_3x3(x, p["conv"]["w"], p["conv"]["b"],
                      scale=sc, shift=sh, silu_in=True, out_dtype=jnp.float32)


def switch_seq_fwd(layers, x, context, time):
    for kind, p in layers:
        if kind == "res":
            x = residual_block_fwd(p, x, time)
        elif kind == "attn":
            x = attention_block_fwd(p, x, context)
        elif kind == "conv":
            x = downsample_conv_fwd(p, x) if p["stride"] == 2 else conv2d_3x3(x, p["w"], p["b"])
        elif kind == "up":
            x = upsample_fwd(p, x)
    return x


def unet_fwd(params, x, context, time):
    skips = []
    for layers in params["encoders"]:
        x = switch_seq_fwd(layers, x, context, time)
        skips.append(x)
    x = switch_seq_fwd(params["bottleneck"], x, context, time)
    for layers in params["decoders"]:
        x = jnp.concatenate([x, skips.pop()], axis=-1)          # channel concat (NHWC)
        x = switch_seq_fwd(layers, x, context, time)
    return x


def diffusion_fwd(params, latent, context, time):
    t = time_embedding_fwd(params["time_embedding"], time)
    x = jnp.transpose(latent, (0, 2, 3, 1)).astype(jnp.bfloat16)   # NCHW -> NHWC
    x = unet_fwd(params["unet"], x, context.astype(jnp.bfloat16), t)
    x = output_layer_fwd(params["final"], x)                       # [N, H, W, 4] f32
    return jnp.transpose(x, (0, 3, 1, 2))                          # back to NCHW


# ----------------------------- main -------------------------------------------------------
if __name__ == "__main__":
    key = jax.random.PRNGKey(0)
    k1, k2, k3 = jax.random.split(key, 3)
    latent = jax.random.normal(k1, (2, 4, 16, 16), jnp.float32)      # [N, 4, H, W]
    context = jax.random.normal(k2, (2, 8, D_CONTEXT), jnp.float32)  # [N, seq, d_context]
    time = jax.random.normal(k3, (1, BASE), jnp.float32)             # [1, d_model]

    params = build_params()
    out = diffusion_fwd(params, latent, context, time)
    out = jax.block_until_ready(out)

    assert out.shape == (2, 4, 16, 16), out.shape
    assert bool(jnp.all(jnp.isfinite(out)))
    print("KERNEL_OK")
</pallas_src>

<mosaic_0001>
module attributes {stable_mosaic.version = 11 : i64} {
  func.func @_matmul_kernel(%arg0: i32, %arg1: i32, %arg2: i32, %arg3: memref<8x128xbf16, #tpu.memory_space<vmem>>, %arg4: memref<128x128xbf16, #tpu.memory_space<vmem>>, %arg5: memref<1x128xf32, #tpu.memory_space<vmem>>, %arg6: memref<8x128xf32, #tpu.memory_space<vmem>>, %arg7: memref<8x128xf32, #tpu.memory_space<vmem>>) attributes {dimension_semantics = [#tpu.dimension_semantics<parallel>, #tpu.dimension_semantics<parallel>, #tpu.dimension_semantics<arbitrary>], iteration_bounds = array<i64: 1, 1, 1>, scalar_prefetch = 0 : i64, scratch_operands = 1 : i64, tpu.core_type = #tpu.core_type<tc>, window_params = [{transform_indices = @transform_0, window_bounds = array<i64: 8, 128>}, {transform_indices = @transform_1, window_bounds = array<i64: 128, 128>}, {transform_indices = @transform_2, window_bounds = array<i64: 1, 128>}, {transform_indices = @transform_3, window_bounds = array<i64: 8, 128>}]} {
    %c0_i32 = arith.constant 0 : i32
    %0 = arith.cmpi eq, %arg2, %c0_i32 : i32
    %1 = arith.extui %0 : i1 to i32
    %c0_i32_0 = arith.constant 0 : i32
    %2 = arith.cmpi ne, %1, %c0_i32_0 : i32
    scf.if %2 {
      %cst_10 = arith.constant 0.000000e+00 : f32
      %12 = vector.broadcast %cst_10 : f32 to vector<8x128xf32>
      %c0_11 = arith.constant 0 : index
      %c0_12 = arith.constant 0 : index
      %13 = vector.load %arg7[%c0_11, %c0_12] : memref<8x128xf32, #tpu.memory_space<vmem>>, vector<8x128xf32>
      tpu.vector_store %arg7[%c0_11, %c0_12], %12 {strides = array<i32>} : memref<8x128xf32, #tpu.memory_space<vmem>>, vector<8x128xf32>,
    } else {
    }
    %c0 = arith.constant 0 : index
    %c0_1 = arith.constant 0 : index
    %3 = vector.load %arg3[%c0, %c0_1] : memref<8x128xbf16, #tpu.memory_space<vmem>>, vector<8x128xbf16>
    %c0_2 = arith.constant 0 : index
    %c0_3 = arith.constant 0 : index
    %4 = vector.load %arg7[%c0_2, %c0_3] : memref<8x128xf32, #tpu.memory_space<vmem>>, vector<8x128xf32>
    %c0_4 = arith.constant 0 : index
    %c0_5 = arith.constant 0 : index
    %5 = vector.load %arg4[%c0_4, %c0_5] : memref<128x128xbf16, #tpu.memory_space<vmem>>, vector<128x128xbf16>
    %cst = arith.constant dense<0.000000e+00> : vector<8x128xf32>
    %6 = tpu.matmul %3, %5, %cst {dimension_numbers = #tpu.dot_dimension_numbers<[1], [0], [0], [1], [0, 0, 1, 1], [], []>} : vector<8x128xbf16>, vector<128x128xbf16>, vector<8x128xf32> -> vector<8x128xf32>
    %7 = arith.addf %4, %6 : vector<8x128xf32>
    %c0_6 = arith.constant 0 : index
    %c0_7 = arith.constant 0 : index
    %8 = vector.load %arg7[%c0_6, %c0_7] : memref<8x128xf32, #tpu.memory_space<vmem>>, vector<8x128xf32>
    tpu.vector_store %arg7[%c0_6, %c0_7], %7 {strides = array<i32>} : memref<8x128xf32, #tpu.memory_space<vmem>>, vector<8x128xf32>,
    %c0_i32_8 = arith.constant 0 : i32
    %9 = arith.cmpi eq, %arg2, %c0_i32_8 : i32
    %10 = arith.extui %9 : i1 to i32
    %c0_i32_9 = arith.constant 0 : i32
    %11 = arith.cmpi ne, %10, %c0_i32_9 : i32
    scf.if %11 {
      %c0_10 = arith.constant 0 : index
      %c0_11 = arith.constant 0 : index
      %12 = vector.load %arg7[%c0_10, %c0_11] : memref<8x128xf32, #tpu.memory_space<vmem>>, vector<8x128xf32>
      %c0_12 = arith.constant 0 : index
      %c0_13 = arith.constant 0 : index
      %13 = vector.load %arg5[%c0_12, %c0_13] : memref<1x128xf32, #tpu.memory_space<vmem>>, vector<1x128xf32>
      %14 = vector.broadcast %13 : vector<1x128xf32> to vector<8x128xf32>
      %15 = arith.addf %12, %14 : vector<8x128xf32>
      %cst_14 = arith.constant 0.000000e+00 : f32
      %16 = vector.broadcast %cst_14 : f32 to vector<8x128xf32>
      %17 = arith.subf %16, %15 : vector<8x128xf32>
      %18 = math.exp %17 : vector<8x128xf32>
      %cst_15 = arith.constant 1.000000e+00 : f32
      %19 = vector.broadcast %cst_15 : f32 to vector<8x128xf32>
      %20 = arith.addf %19, %18 : vector<8x128xf32>
      %21 = tpu.reciprocal %20 {approx = true} : vector<8x128xf32> -> vector<8x128xf32>
      %22 = arith.mulf %15, %21 : vector<8x128xf32>
      %c0_16 = arith.constant 0 : index
      %c0_17 = arith.constant 0 : index
      %23 = vector.load %arg6[%c0_16, %c0_17] : memref<8x128xf32, #tpu.memory_space<vmem>>, vector<8x128xf32>
      tpu.vector_store %arg6[%c0_16, %c0_17], %22 {strides = array<i32>} : memref<8x128xf32, #tpu.memory_space<vmem>>, vector<8x128xf32>,
    } else {
    }
    return
  }
  func.func @transform_0(%arg0: i32, %arg1: i32, %arg2: i32) -> (i32, i32) {
    %c0_i32 = arith.constant 0 : i32
    return %arg0, %arg2 : i32, i32
  }
  func.func @transform_1(%arg0: i32, %arg1: i32, %arg2: i32) -> (i32, i32) {
    %c0_i32 = arith.constant 0 : i32
    return %arg2, %arg1 : i32, i32
  }
  func.func @transform_2(%arg0: i32, %arg1: i32, %arg2: i32) -> (i32, i32) {
    %c0_i32 = arith.constant 0 : i32
    %c0_i32_0 = arith.constant 0 : i32
    return %c0_i32, %arg1 : i32, i32
  }
  func.func @transform_3(%arg0: i32, %arg1: i32, %arg2: i32) -> (i32, i32) {
    %c0_i32 = arith.constant 0 : i32
    return %arg0, %arg1 : i32, i32
  }
}

</mosaic_0001>

<bundles_post_ra>
// kernel: tpu_custom_call.1
= control target key start
LH: loop header
LB: loop body
LE: loop exit
PB: predicated region body
PF: predicated region fallthrough
CT: control target
= control target key end

     0   :  { %8 = vsyncpa [#allocation4], 0  ;;  %s352_s0 = inlined_call_operand.hbm [shape: bf16[8,128], index: 0, kind: input, shape index: {}]   ;;  %s353_s1 = inlined_call_operand.hbm [shape: bf16[128,128], index: 1, kind: input, shape index: {}]   ;;  %s354_s2 = inlined_call_operand.vmem [shape: f32[1,128], index: 2, kind: input, shape index: {}]   ;;  %s355_s3 = inlined_call_operand.hbm [shape: f32[8,128], index: 3, kind: output, shape index: {}]  }
   0x1   :  { %9 = vsyncpa [#allocation7], 0 }
   0x2   :  { %10 = vsyncpa [#allocation5], 0  ;;  %s313_s12 = smov [#allocation3]   ;;  %s314_s14 = smov [#allocation6]  }
   0x3   :  { %s17_s13 = sshll.u32 %s313_s12, 4  ;;  %s26_s15 = sshll.u32 %s314_s14, 4  ;;  %s18_s13 = int_to_ptr.vmem [resolvable:$true] %s17_s13  ;;  %s27_s15 = int_to_ptr.vmem [resolvable:$true] %s26_s15 }
   0x4   :  { %s255_s16 = scalar_lea.vmem %s18_s13, 64  ;;  %p260_p1 = scmp.lt.s32.totalorder %s18_s13, %s18_s13 }
   0x5   :  { %p256_p0 = scmp.ne.s32.totalorder %s18_s13, %s255_s16  ;;  %p261_p2 = scmp.lt.s32.totalorder %s255_s16, %s255_s16 }
   0x7   :  { %p262_p3 = por %p261_p2, %p260_p1 }
   0x9   :  { %p263_p4 = pnand %p262_p3, %p256_p0 }
   0xb   :  { %266 = shalt.err (!%p263_p4)
}
   0xc   :  { %20 = dma.hbm_to_vmem [thread:$0]  %s352_s0, 64, %s18_s13, [#allocation4]  }
   0xd   :  { %s275_s19 = scalar_lea.vmem %s27_s15, 1024  ;;  %p280_p6 = scmp.lt.s32.totalorder %s27_s15, %s27_s15 }
   0xe   :  { %p276_p5 = scmp.ne.s32.totalorder %s27_s15, %s275_s19  ;;  %p281_p7 = scmp.lt.s32.totalorder %s275_s19, %s275_s19 }
  0x10   :  { %p282_p8 = por %p281_p7, %p280_p6 }
  0x12   :  { %p283_p9 = pnand %p282_p8, %p276_p5 }
  0x14   :  { %286 = shalt.err (!%p283_p9)
}
  0x15   :  { %s315_s20 = smov 64   ;;  %s316_s21 = smov 4  }
  0x16   :  { %32 = dma.hbm_to_vmem [thread:$0]  %s353_s1, 1024, %s27_s15, [#allocation7], %s315_s20, %s315_s20, %s316_s21  }
  0x17   :  { %307 = dma.done.wait [#allocation4], 64  }
  0x18   :  { %308 = vsyncadd [#allocation4], 4294967232 }
  0x19   :  { %309 = dma.done.wait [#allocation7], 1024  }
  0x1a   :  { %310 = vsyncadd [#allocation7], 4294966272  ;;  %v317_v0 = vmov 0.0   ;;  %vm318_vm0 = vmmov 0   ;;  %v235_v1 = vld [vmem:[#allocation6 + $0x38] sm:$0xff]   ;;  %v236_v2 = vld [vmem:[#allocation6 + $0x30] sm:$0xff]  }
  0x1b   :  { %208 = vmatprep.subr.bf16.mxu0 %v317_v0  ;;  %224 = vmatprep.mubr.msk.bf16.mxu0 %vm318_vm0, %v317_v0  ;;  %v237_v3 = vld [vmem:[#allocation6 + $0x28] sm:$0xff]   ;;  %v238_v4 = vld [vmem:[#allocation6 + $0x20] sm:$0xff]   ;;  %v239_v5 = vld [vmem:[#allocation6 + $0x18] sm:$0xff]   ;;  %s319_s24 = smov [#allocation8]  }
  0x1c   :  { %209 = vmatpush3.bf16.msra.mxu0 %v235_v1  ;;  %v240_v6 = vld [vmem:[#allocation6 + $0x10] sm:$0xff]   ;;  %v241_v7 = vld [vmem:[#allocation6 + $0x8] sm:$0xff]   ;;  %v242_v8 = vld [vmem:[#allocation6] sm:$0xff]   ;;  %s180_s25 = sshll.u32 %s319_s24, 4  ;;  %s181_s25 = int_to_ptr.vmem [resolvable:$true] %s180_s25 }
  0x1d   :  { %210 = vmatprep.subr.bf16.mxu0 %v317_v0  ;;  %v47_v9 = vld [vmem:[#allocation3] sm:$0xf]  ;;  %s287_s26 = scalar_lea.vmem %s181_s25, 128  ;;  %p292_p11 = scmp.lt.s32.totalorder %s181_s25, %s181_s25 }
  0x1e   :  { %v198_v10 = vld [vmem:[%s354_s2] ss:$0 sm:$0xff]  ;;  %p288_p10 = scmp.ne.s32.totalorder %s181_s25, %s287_s26  ;;  %p293_p12 = scmp.lt.s32.totalorder %s287_s26, %s287_s26 }
  0x20   :  { %211 = vmatpush3.bf16.msra.mxu0 %v236_v2  ;;  %p294_p13 = por %p293_p12, %p292_p11 }
  0x21   :  { %212 = vmatprep.subr.bf16.mxu0 %v317_v0 }
  0x22   :  { %p295_p0 = pnand %p294_p13, %p288_p10 }
  0x24   :  { %213 = vmatpush3.bf16.msra.mxu0 %v237_v3 }
  0x25   :  { %214 = vmatprep.subr.bf16.mxu0 %v317_v0 }
  0x28   :  { %215 = vmatpush3.bf16.msra.mxu0 %v238_v4 }
  0x29   :  { %216 = vmatprep.subr.bf16.mxu0 %v317_v0 }
  0x2c   :  { %217 = vmatpush3.bf16.msra.mxu0 %v239_v5 }
  0x2d   :  { %218 = vmatprep.subr.bf16.mxu0 %v317_v0 }
  0x30   :  { %219 = vmatpush3.bf16.msra.mxu0 %v240_v6 }
  0x31   :  { %220 = vmatprep.subr.bf16.mxu0 %v317_v0 }
  0x34   :  { %221 = vmatpush3.bf16.msra.mxu0 %v241_v7 }
  0x35   :  { %222 = vmatprep.subr.bf16.mxu0 %v317_v0 }
  0x38   :  { %223 = vmatpush3.bf16.msra.mxu0 %v242_v8 }
  0x3b   :  { %225 = vmatmul.mubr.bf16.vlgmr.msra.gmra.mxu0 %v47_v9 }
  0xfb   :  { %v147_v11 = vpop.f32.mrf.mxu0 }
  0xfc   :  { %v166_v12 = vadd.f32 %v198_v10, %v147_v11 }
  0xfd   :  { %v226_v13 = vpop.f32.mrf.mxu0 }
  0xfe   :  { %v167_v14 = vsub.f32 0.0, %v166_v12 }
  0xff   :  { %v150_v15 = vpop.f32.mrf.mxu0 }
 0x100   :  { %v168_v16 = vmul.f32 1.442695, %v167_v14 }
 0x101   :  { %v227_v17 = vpop.f32.mrf.mxu0 }
 0x102   :  { %243 = vpow2.f32 %v168_v16 }
 0x10f   :  { %v244_v18 = vpop.eup %243 }
 0x110   :  { %v170_v19 = vadd.f32 1.0, %v244_v18 }
 0x112   :  { %245 = vrcp.f32 %v170_v19 }
 0x11f   :  { %v246_v20 = vpop.eup %245 }
 0x120   :  { %v172_v21 = vmul.f32 %v246_v20, %v166_v12 }
 0x122   :  { %173 = vst [vmem:[#allocation8] sm:$0xff] %v172_v21 }
 0x123   :  { %298 = shalt.err (!%p295_p0)
}
 0x124   :  { %183 = dma.vmem_to_hbm [thread:$0]  %s181_s25, 128, %s355_s3, [#allocation5]  }
 0x125   :  { %311 = dma.done.wait [#allocation5], 128  }
 0x126   :  { %312 = vsyncadd [#allocation5], 4294967168 }
 0x127   :  { %187 = vsyncpa [#allocation4], 1 }
 0x128   :  { %188 = vsyncpa [#allocation7], 1 }
 0x129   :  { %189 = vsyncpa [#allocation5], 1 }

</bundles_post_ra>
